<compile_context>
chip_gen: v7x
topology: tpu7x:2x2x1
jax: 0.10.0
libtpu: 0.0.40
codegen_flags: <defaults>
</compile_context>

<pallas_src>
import functools

import jax
import jax.numpy as jnp
from jax import lax
from jax.experimental import pallas as pl
from jax.experimental.pallas import tpu as pltpu


def _mha_kernel(x_ref, wqkv_ref, wo_ref, bo_ref, out_ref, *, num_heads, head_size):
    # x_ref:    (B, T, C)
    # wqkv_ref: (C, 3C)   columns: [Q heads | K heads | V heads], x @ W orientation
    # wo_ref:   (C, C)    already transposed to x @ W orientation
    # bo_ref:   (1, C)
    # out_ref:  (B, T, C)
    B, T, C = x_ref.shape
    H, hs = num_heads, head_size
    scale = float(C) ** (-0.5)   # NOTE: torch module scales by C**-0.5 (n_embd), not hs**-0.5

    # --- fused QKV projection: one wide MXU matmul for all batches & heads ---
    x2 = x_ref[...].reshape(B * T, C)                       # fold batch into sublanes
    qkv = jnp.dot(x2, wqkv_ref[...],
                  preferred_element_type=jnp.float32)       # (B*T, 3C)
    qkv3 = qkv.reshape(B, T, 3 * C)

    # Q/K/V slabs hoisted out of the head loop; scale applied once to q.
    q_all = qkv3[:, :, 0 * C:1 * C] * scale                 # (B, T, C)
    k_all = qkv3[:, :, 1 * C:2 * C]                         # (B, T, C)
    v_all = qkv3[:, :, 2 * C:3 * C]                         # (B, T, C)

    # --- causal mask, built once ---
    row = lax.broadcasted_iota(jnp.int32, (T, T), 0)
    col = lax.broadcasted_iota(jnp.int32, (T, T), 1)
    causal = (col <= row)[None]                             # (1, T, T)
    neg = jnp.float32(-1e30)   # finite: avoids inf-inf NaN if a row were fully masked

    wo_t = wo_ref[...]                                      # (C, C)
    acc = jnp.zeros((B * T, C), dtype=jnp.float32)

    for h in range(H):                                      # static python loop (H small)
        q = q_all[:, :, h * hs:(h + 1) * hs]                # (B, T, hs)
        k = k_all[:, :, h * hs:(h + 1) * hs]
        v = v_all[:, :, h * hs:(h + 1) * hs]

        s = jnp.einsum('btd,bsd->bts', q, k,
                       preferred_element_type=jnp.float32)  # (B, T, T)
        s = jnp.where(causal, s, neg)                       # masked_fill(tril==0, -inf)
        m = jnp.max(s, axis=-1, keepdims=True)
        e = jnp.exp(s - m)
        denom = jnp.sum(e, axis=-1, keepdims=True)
        p = e * pl.reciprocal(denom, approx=True)           # EUP slot, frees VALU
        # attention dropout: identity (eval mode)
        ho = jnp.einsum('bts,bsd->btd', p, v,
                        preferred_element_type=jnp.float32)  # (B, T, hs)

        # output projection folded into per-head accumulation (no concatenate)
        acc = acc + jnp.dot(ho.reshape(B * T, hs),
                            wo_t[h * hs:(h + 1) * hs, :],
                            preferred_element_type=jnp.float32)

    out = acc + bo_ref[0]
    # output dropout: identity (eval mode)
    out_ref[...] = out.reshape(B, T, C).astype(out_ref.dtype)


def multi_head_attention(x, wq, wk, wv, wo, bo, *, num_heads, head_size):
    """x: (B, T, C); wq/wk/wv: (H, head_size, C) torch-Linear weights;
    wo: (C, C) torch-Linear weight (out = x @ W.T + b); bo: (C,)."""
    B, T, C = x.shape
    H, hs = num_heads, head_size
    assert H * hs == C

    # --- one-time layout plumbing in the wrapper (keeps transposes out of the kernel) ---
    # per-head torch weight W[h] is (hs, C) with q_h = x @ W[h].T  ->  column block h of (C, H*hs)
    wq_t = jnp.transpose(wq, (2, 0, 1)).reshape(C, C)
    wk_t = jnp.transpose(wk, (2, 0, 1)).reshape(C, C)
    wv_t = jnp.transpose(wv, (2, 0, 1)).reshape(C, C)
    wqkv = jnp.concatenate([wq_t, wk_t, wv_t], axis=1)      # (C, 3C)
    wo_t = wo.T                                             # (C, C), x @ W orientation
    bo2 = bo.reshape(1, C)

    kernel = functools.partial(_mha_kernel, num_heads=H, head_size=hs)

    vmem = lambda: pl.BlockSpec(memory_space=pltpu.MemorySpace.VMEM)
    # Single kernel invocation (grid=()): whole problem fits comfortably in VMEM
    # at these shapes, so per-grid-step overhead is eliminated.
    return pl.pallas_call(
        kernel,
        out_shape=jax.ShapeDtypeStruct((B, T, C), x.dtype),
        in_specs=[vmem(), vmem(), vmem(), vmem()],
        out_specs=vmem(),
    )(x, wqkv, wo_t, bo2)


def _reference(x, wq, wk, wv, wo, bo):
    """Plain-JAX reference matching the PyTorch forward (eval mode)."""
    B, T, C = x.shape
    H, hs, _ = wq.shape
    scale = float(C) ** (-0.5)
    tril = jnp.tril(jnp.ones((T, T), dtype=bool))
    outs = []
    for h in range(H):
        q = x @ wq[h].T
        k = x @ wk[h].T
        v = x @ wv[h].T
        wei = (q @ jnp.swapaxes(k, -2, -1)) * scale
        wei = jnp.where(tril[None], wei, -jnp.inf)
        wei = jax.nn.softmax(wei, axis=-1)
        outs.append(wei @ v)
    cat = jnp.concatenate(outs, axis=-1)
    return cat @ wo.T + bo


if __name__ == "__main__":
    # Shapes consistent with the module: block_size = seq = 8, n_embd = 32,
    # num_heads = 4, head_size = 8.
    B, T = 2, 8
    n_embd = 32
    num_heads = 4
    head_size = n_embd // num_heads

    key = jax.random.PRNGKey(0)
    kx, kq, kk, kv, kwo, kbo = jax.random.split(key, 6)

    x = jax.random.normal(kx, (B, T, n_embd), dtype=jnp.float32)
    wq = jax.random.normal(kq, (num_heads, head_size, n_embd), dtype=jnp.float32) * 0.1
    wk = jax.random.normal(kk, (num_heads, head_size, n_embd), dtype=jnp.float32) * 0.1
    wv = jax.random.normal(kv, (num_heads, head_size, n_embd), dtype=jnp.float32) * 0.1
    wo = jax.random.normal(kwo, (n_embd, n_embd), dtype=jnp.float32) * 0.1
    bo = jax.random.normal(kbo, (n_embd,), dtype=jnp.float32) * 0.1

    out = multi_head_attention(x, wq, wk, wv, wo, bo,
                               num_heads=num_heads, head_size=head_size)
    out = jax.block_until_ready(out)

    ref = _reference(x, wq, wk, wv, wo, bo)
    assert out.shape == (B, T, n_embd)
    # Slightly relaxed tolerance: softmax denominator uses the EUP approximate
    # reciprocal (pl.reciprocal(..., approx=True)).
    assert jnp.allclose(out, ref, atol=2e-3, rtol=2e-3), "mismatch vs reference"

    print("KERNEL_OK")
</pallas_src>

<mosaic_0001>
module attributes {stable_mosaic.version = 11 : i64} {
  func.func @_mha_kernel(%arg0: memref<2x8x32xf32, #tpu.memory_space<vmem>>, %arg1: memref<32x96xf32, #tpu.memory_space<vmem>>, %arg2: memref<32x32xf32, #tpu.memory_space<vmem>>, %arg3: memref<1x32xf32, #tpu.memory_space<vmem>>, %arg4: memref<2x8x32xf32, #tpu.memory_space<vmem>>) attributes {dimension_semantics = [], scalar_prefetch = 0 : i64, scratch_operands = 0 : i64, tpu.core_type = #tpu.core_type<tc>} {
    %c0 = arith.constant 0 : index
    %c0_0 = arith.constant 0 : index
    %c0_1 = arith.constant 0 : index
    %0 = vector.load %arg0[%c0, %c0_0, %c0_1] : memref<2x8x32xf32, #tpu.memory_space<vmem>>, vector<2x8x32xf32>
    %1 = vector.shape_cast %0 : vector<2x8x32xf32> to vector<16x32xf32>
    %c0_2 = arith.constant 0 : index
    %c0_3 = arith.constant 0 : index
    %2 = vector.load %arg1[%c0_2, %c0_3] : memref<32x96xf32, #tpu.memory_space<vmem>>, vector<32x96xf32>
    %cst = arith.constant dense<0.000000e+00> : vector<16x96xf32>
    %3 = tpu.matmul %1, %2, %cst {dimension_numbers = #tpu.dot_dimension_numbers<[1], [0], [0], [1], [0, 0, 1, 1], [], []>} : vector<16x32xf32>, vector<32x96xf32>, vector<16x96xf32> -> vector<16x96xf32>
    %4 = vector.shape_cast %3 : vector<16x96xf32> to vector<2x8x96xf32>
    %5 = vector.extract_strided_slice %4 {offsets = [0, 0, 0], sizes = [2, 8, 32], strides = [1, 1, 1]} : vector<2x8x96xf32> to vector<2x8x32xf32>
    %cst_4 = arith.constant 0.176776692 : f32
    %6 = vector.broadcast %cst_4 : f32 to vector<2x8x32xf32>
    %7 = arith.mulf %5, %6 : vector<2x8x32xf32>
    %8 = vector.extract_strided_slice %4 {offsets = [0, 0, 32], sizes = [2, 8, 32], strides = [1, 1, 1]} : vector<2x8x96xf32> to vector<2x8x32xf32>
    %9 = vector.extract_strided_slice %4 {offsets = [0, 0, 64], sizes = [2, 8, 32], strides = [1, 1, 1]} : vector<2x8x96xf32> to vector<2x8x32xf32>
    %10 = tpu.iota {dimensions = array<i32: 0>} : vector<8x8xi32>
    %11 = tpu.iota {dimensions = array<i32: 1>} : vector<8x8xi32>
    %12 = arith.cmpi sle, %11, %10 : vector<8x8xi32>
    %13 = vector.shape_cast %12 : vector<8x8xi1> to vector<1x8x8xi1>
    %c0_5 = arith.constant 0 : index
    %c0_6 = arith.constant 0 : index
    %14 = vector.load %arg2[%c0_5, %c0_6] : memref<32x32xf32, #tpu.memory_space<vmem>>, vector<32x32xf32>
    %cst_7 = arith.constant 0.000000e+00 : f32
    %15 = vector.broadcast %cst_7 : f32 to vector<16x32xf32>
    %16 = vector.extract_strided_slice %7 {offsets = [0, 0, 0], sizes = [2, 8, 8], strides = [1, 1, 1]} : vector<2x8x32xf32> to vector<2x8x8xf32>
    %17 = vector.extract_strided_slice %8 {offsets = [0, 0, 0], sizes = [2, 8, 8], strides = [1, 1, 1]} : vector<2x8x32xf32> to vector<2x8x8xf32>
    %18 = vector.extract_strided_slice %9 {offsets = [0, 0, 0], sizes = [2, 8, 8], strides = [1, 1, 1]} : vector<2x8x32xf32> to vector<2x8x8xf32>
    "tpu.trace_start"() <{level = 10 : i32, message = "btd,bsd->bts"}> : () -> ()
    %cst_8 = arith.constant dense<0.000000e+00> : vector<2x8x8xf32>
    %19 = tpu.matmul %16, %17, %cst_8 {dimension_numbers = #tpu.dot_dimension_numbers<[2], [2], [1], [1], [0, 0, 0, 1, 1, 1], [0], [0]>} : vector<2x8x8xf32>, vector<2x8x8xf32>, vector<2x8x8xf32> -> vector<2x8x8xf32>
    %cst_9 = arith.constant -1.000000e+30 : f32
    "tpu.trace_stop"() : () -> ()
    %20 = vector.shape_cast %13 : vector<1x8x8xi1> to vector<1x8x8xi1>
    %21 = vector.broadcast %20 : vector<1x8x8xi1> to vector<2x8x8xi1>
    %22 = vector.broadcast %cst_9 : f32 to vector<2x8x8xf32>
    %23 = arith.select %21, %19, %22 : vector<2x8x8xi1>, vector<2x8x8xf32>
    %cst_10 = arith.constant dense<0xFF800000> : vector<2x8xf32>
    %24 = vector.multi_reduction <maximumf>, %23, %cst_10 [2] : vector<2x8x8xf32> to vector<2x8xf32>
    %25 = vector.shape_cast %24 : vector<2x8xf32> to vector<2x8x1xf32>
    %26 = vector.broadcast %25 : vector<2x8x1xf32> to vector<2x8x8xf32>
    %27 = arith.subf %23, %26 : vector<2x8x8xf32>
    %28 = math.exp %27 : vector<2x8x8xf32>
    %cst_11 = arith.constant dense<0.000000e+00> : vector<2x8xf32>
    %29 = vector.multi_reduction <add>, %28, %cst_11 [2] : vector<2x8x8xf32> to vector<2x8xf32>
    %30 = vector.shape_cast %29 : vector<2x8xf32> to vector<2x8x1xf32>
    %31 = tpu.reciprocal %30 {approx = true} : vector<2x8x1xf32> -> vector<2x8x1xf32>
    %32 = vector.broadcast %31 : vector<2x8x1xf32> to vector<2x8x8xf32>
    %33 = arith.mulf %28, %32 : vector<2x8x8xf32>
    "tpu.trace_start"() <{level = 10 : i32, message = "bts,bsd->btd"}> : () -> ()
    %cst_12 = arith.constant dense<0.000000e+00> : vector<2x8x8xf32>
    %34 = tpu.matmul %33, %18, %cst_12 {dimension_numbers = #tpu.dot_dimension_numbers<[2], [1], [1], [2], [0, 0, 0, 1, 1, 2], [0], [0]>} : vector<2x8x8xf32>, vector<2x8x8xf32>, vector<2x8x8xf32> -> vector<2x8x8xf32>
    "tpu.trace_stop"() : () -> ()
    %35 = vector.shape_cast %34 : vector<2x8x8xf32> to vector<16x8xf32>
    %36 = vector.extract_strided_slice %14 {offsets = [0, 0], sizes = [8, 32], strides = [1, 1]} : vector<32x32xf32> to vector<8x32xf32>
    %cst_13 = arith.constant dense<0.000000e+00> : vector<16x32xf32>
    %37 = tpu.matmul %35, %36, %cst_13 {dimension_numbers = #tpu.dot_dimension_numbers<[1], [0], [0], [1], [0, 0, 1, 1], [], []>} : vector<16x8xf32>, vector<8x32xf32>, vector<16x32xf32> -> vector<16x32xf32>
    %38 = arith.addf %15, %37 : vector<16x32xf32>
    %39 = vector.extract_strided_slice %7 {offsets = [0, 0, 8], sizes = [2, 8, 8], strides = [1, 1, 1]} : vector<2x8x32xf32> to vector<2x8x8xf32>
    %40 = vector.extract_strided_slice %8 {offsets = [0, 0, 8], sizes = [2, 8, 8], strides = [1, 1, 1]} : vector<2x8x32xf32> to vector<2x8x8xf32>
    %41 = vector.extract_strided_slice %9 {offsets = [0, 0, 8], sizes = [2, 8, 8], strides = [1, 1, 1]} : vector<2x8x32xf32> to vector<2x8x8xf32>
    "tpu.trace_start"() <{level = 10 : i32, message = "btd,bsd->bts"}> : () -> ()
    %cst_14 = arith.constant dense<0.000000e+00> : vector<2x8x8xf32>
    %42 = tpu.matmul %39, %40, %cst_14 {dimension_numbers = #tpu.dot_dimension_numbers<[2], [2], [1], [1], [0, 0, 0, 1, 1, 1], [0], [0]>} : vector<2x8x8xf32>, vector<2x8x8xf32>, vector<2x8x8xf32> -> vector<2x8x8xf32>
    %cst_15 = arith.constant -1.000000e+30 : f32
    "tpu.trace_stop"() : () -> ()
    %43 = vector.shape_cast %13 : vector<1x8x8xi1> to vector<1x8x8xi1>
    %44 = vector.broadcast %43 : vector<1x8x8xi1> to vector<2x8x8xi1>
    %45 = vector.broadcast %cst_15 : f32 to vector<2x8x8xf32>
    %46 = arith.select %44, %42, %45 : vector<2x8x8xi1>, vector<2x8x8xf32>
    %cst_16 = arith.constant dense<0xFF800000> : vector<2x8xf32>
    %47 = vector.multi_reduction <maximumf>, %46, %cst_16 [2] : vector<2x8x8xf32> to vector<2x8xf32>
    %48 = vector.shape_cast %47 : vector<2x8xf32> to vector<2x8x1xf32>
    %49 = vector.broadcast %48 : vector<2x8x1xf32> to vector<2x8x8xf32>
    %50 = arith.subf %46, %49 : vector<2x8x8xf32>
    %51 = math.exp %50 : vector<2x8x8xf32>
    %cst_17 = arith.constant dense<0.000000e+00> : vector<2x8xf32>
    %52 = vector.multi_reduction <add>, %51, %cst_17 [2] : vector<2x8x8xf32> to vector<2x8xf32>
    %53 = vector.shape_cast %52 : vector<2x8xf32> to vector<2x8x1xf32>
    %54 = tpu.reciprocal %53 {approx = true} : vector<2x8x1xf32> -> vector<2x8x1xf32>
    %55 = vector.broadcast %54 : vector<2x8x1xf32> to vector<2x8x8xf32>
    %56 = arith.mulf %51, %55 : vector<2x8x8xf32>
    "tpu.trace_start"() <{level = 10 : i32, message = "bts,bsd->btd"}> : () -> ()
    %cst_18 = arith.constant dense<0.000000e+00> : vector<2x8x8xf32>
    %57 = tpu.matmul %56, %41, %cst_18 {dimension_numbers = #tpu.dot_dimension_numbers<[2], [1], [1], [2], [0, 0, 0, 1, 1, 2], [0], [0]>} : vector<2x8x8xf32>, vector<2x8x8xf32>, vector<2x8x8xf32> -> vector<2x8x8xf32>
    "tpu.trace_stop"() : () -> ()
    %58 = vector.shape_cast %57 : vector<2x8x8xf32> to vector<16x8xf32>
    %59 = vector.extract_strided_slice %14 {offsets = [8, 0], sizes = [8, 32], strides = [1, 1]} : vector<32x32xf32> to vector<8x32xf32>
    %cst_19 = arith.constant dense<0.000000e+00> : vector<16x32xf32>
    %60 = tpu.matmul %58, %59, %cst_19 {dimension_numbers = #tpu.dot_dimension_numbers<[1], [0], [0], [1], [0, 0, 1, 1], [], []>} : vector<16x8xf32>, vector<8x32xf32>, vector<16x32xf32> -> vector<16x32xf32>
    %61 = arith.addf %38, %60 : vector<16x32xf32>
    %62 = vector.extract_strided_slice %7 {offsets = [0, 0, 16], sizes = [2, 8, 8], strides = [1, 1, 1]} : vector<2x8x32xf32> to vector<2x8x8xf32>
    %63 = vector.extract_strided_slice %8 {offsets = [0, 0, 16], sizes = [2, 8, 8], strides = [1, 1, 1]} : vector<2x8x32xf32> to vector<2x8x8xf32>
    %64 = vector.extract_strided_slice %9 {offsets = [0, 0, 16], sizes = [2, 8, 8], strides = [1, 1, 1]} : vector<2x8x32xf32> to vector<2x8x8xf32>
    "tpu.trace_start"() <{level = 10 : i32, message = "btd,bsd->bts"}> : () -> ()
    %cst_20 = arith.constant dense<0.000000e+00> : vector<2x8x8xf32>
    %65 = tpu.matmul %62, %63, %cst_20 {dimension_numbers = #tpu.dot_dimension_numbers<[2], [2], [1], [1], [0, 0, 0, 1, 1, 1], [0], [0]>} : vector<2x8x8xf32>, vector<2x8x8xf32>, vector<2x8x8xf32> -> vector<2x8x8xf32>
    %cst_21 = arith.constant -1.000000e+30 : f32
    "tpu.trace_stop"() : () -> ()
    %66 = vector.shape_cast %13 : vector<1x8x8xi1> to vector<1x8x8xi1>
    %67 = vector.broadcast %66 : vector<1x8x8xi1> to vector<2x8x8xi1>
    %68 = vector.broadcast %cst_21 : f32 to vector<2x8x8xf32>
    %69 = arith.select %67, %65, %68 : vector<2x8x8xi1>, vector<2x8x8xf32>
    %cst_22 = arith.constant dense<0xFF800000> : vector<2x8xf32>
    %70 = vector.multi_reduction <maximumf>, %69, %cst_22 [2] : vector<2x8x8xf32> to vector<2x8xf32>
    %71 = vector.shape_cast %70 : vector<2x8xf32> to vector<2x8x1xf32>
    %72 = vector.broadcast %71 : vector<2x8x1xf32> to vector<2x8x8xf32>
    %73 = arith.subf %69, %72 : vector<2x8x8xf32>
    %74 = math.exp %73 : vector<2x8x8xf32>
    %cst_23 = arith.constant dense<0.000000e+00> : vector<2x8xf32>
    %75 = vector.multi_reduction <add>, %74, %cst_23 [2] : vector<2x8x8xf32> to vector<2x8xf32>
    %76 = vector.shape_cast %75 : vector<2x8xf32> to vector<2x8x1xf32>
    %77 = tpu.reciprocal %76 {approx = true} : vector<2x8x1xf32> -> vector<2x8x1xf32>
    %78 = vector.broadcast %77 : vector<2x8x1xf32> to vector<2x8x8xf32>
    %79 = arith.mulf %74, %78 : vector<2x8x8xf32>
    "tpu.trace_start"() <{level = 10 : i32, message = "bts,bsd->btd"}> : () -> ()
    %cst_24 = arith.constant dense<0.000000e+00> : vector<2x8x8xf32>
    %80 = tpu.matmul %79, %64, %cst_24 {dimension_numbers = #tpu.dot_dimension_numbers<[2], [1], [1], [2], [0, 0, 0, 1, 1, 2], [0], [0]>} : vector<2x8x8xf32>, vector<2x8x8xf32>, vector<2x8x8xf32> -> vector<2x8x8xf32>
    "tpu.trace_stop"() : () -> ()
    %81 = vector.shape_cast %80 : vector<2x8x8xf32> to vector<16x8xf32>
    %82 = vector.extract_strided_slice %14 {offsets = [16, 0], sizes = [8, 32], strides = [1, 1]} : vector<32x32xf32> to vector<8x32xf32>
    %cst_25 = arith.constant dense<0.000000e+00> : vector<16x32xf32>
    %83 = tpu.matmul %81, %82, %cst_25 {dimension_numbers = #tpu.dot_dimension_numbers<[1], [0], [0], [1], [0, 0, 1, 1], [], []>} : vector<16x8xf32>, vector<8x32xf32>, vector<16x32xf32> -> vector<16x32xf32>
    %84 = arith.addf %61, %83 : vector<16x32xf32>
    %85 = vector.extract_strided_slice %7 {offsets = [0, 0, 24], sizes = [2, 8, 8], strides = [1, 1, 1]} : vector<2x8x32xf32> to vector<2x8x8xf32>
    %86 = vector.extract_strided_slice %8 {offsets = [0, 0, 24], sizes = [2, 8, 8], strides = [1, 1, 1]} : vector<2x8x32xf32> to vector<2x8x8xf32>
    %87 = vector.extract_strided_slice %9 {offsets = [0, 0, 24], sizes = [2, 8, 8], strides = [1, 1, 1]} : vector<2x8x32xf32> to vector<2x8x8xf32>
    "tpu.trace_start"() <{level = 10 : i32, message = "btd,bsd->bts"}> : () -> ()
    %cst_26 = arith.constant dense<0.000000e+00> : vector<2x8x8xf32>
    %88 = tpu.matmul %85, %86, %cst_26 {dimension_numbers = #tpu.dot_dimension_numbers<[2], [2], [1], [1], [0, 0, 0, 1, 1, 1], [0], [0]>} : vector<2x8x8xf32>, vector<2x8x8xf32>, vector<2x8x8xf32> -> vector<2x8x8xf32>
    %cst_27 = arith.constant -1.000000e+30 : f32
    "tpu.trace_stop"() : () -> ()
    %89 = vector.shape_cast %13 : vector<1x8x8xi1> to vector<1x8x8xi1>
    %90 = vector.broadcast %89 : vector<1x8x8xi1> to vector<2x8x8xi1>
    %91 = vector.broadcast %cst_27 : f32 to vector<2x8x8xf32>
    %92 = arith.select %90, %88, %91 : vector<2x8x8xi1>, vector<2x8x8xf32>
    %cst_28 = arith.constant dense<0xFF800000> : vector<2x8xf32>
    %93 = vector.multi_reduction <maximumf>, %92, %cst_28 [2] : vector<2x8x8xf32> to vector<2x8xf32>
    %94 = vector.shape_cast %93 : vector<2x8xf32> to vector<2x8x1xf32>
    %95 = vector.broadcast %94 : vector<2x8x1xf32> to vector<2x8x8xf32>
    %96 = arith.subf %92, %95 : vector<2x8x8xf32>
    %97 = math.exp %96 : vector<2x8x8xf32>
    %cst_29 = arith.constant dense<0.000000e+00> : vector<2x8xf32>
    %98 = vector.multi_reduction <add>, %97, %cst_29 [2] : vector<2x8x8xf32> to vector<2x8xf32>
    %99 = vector.shape_cast %98 : vector<2x8xf32> to vector<2x8x1xf32>
    %100 = tpu.reciprocal %99 {approx = true} : vector<2x8x1xf32> -> vector<2x8x1xf32>
    %101 = vector.broadcast %100 : vector<2x8x1xf32> to vector<2x8x8xf32>
    %102 = arith.mulf %97, %101 : vector<2x8x8xf32>
    "tpu.trace_start"() <{level = 10 : i32, message = "bts,bsd->btd"}> : () -> ()
    %cst_30 = arith.constant dense<0.000000e+00> : vector<2x8x8xf32>
    %103 = tpu.matmul %102, %87, %cst_30 {dimension_numbers = #tpu.dot_dimension_numbers<[2], [1], [1], [2], [0, 0, 0, 1, 1, 2], [0], [0]>} : vector<2x8x8xf32>, vector<2x8x8xf32>, vector<2x8x8xf32> -> vector<2x8x8xf32>
    "tpu.trace_stop"() : () -> ()
    %104 = vector.shape_cast %103 : vector<2x8x8xf32> to vector<16x8xf32>
    %105 = vector.extract_strided_slice %14 {offsets = [24, 0], sizes = [8, 32], strides = [1, 1]} : vector<32x32xf32> to vector<8x32xf32>
    %cst_31 = arith.constant dense<0.000000e+00> : vector<16x32xf32>
    %106 = tpu.matmul %104, %105, %cst_31 {dimension_numbers = #tpu.dot_dimension_numbers<[1], [0], [0], [1], [0, 0, 1, 1], [], []>} : vector<16x8xf32>, vector<8x32xf32>, vector<16x32xf32> -> vector<16x32xf32>
    %107 = arith.addf %84, %106 : vector<16x32xf32>
    %c0_32 = arith.constant 0 : index
    %c0_33 = arith.constant 0 : index
    %108 = vector.load %arg3[%c0_32, %c0_33] : memref<1x32xf32, #tpu.memory_space<vmem>>, vector<1x32xf32>
    %109 = vector.shape_cast %108 : vector<1x32xf32> to vector<32xf32>
    %110 = vector.shape_cast %109 : vector<32xf32> to vector<1x32xf32>
    %111 = vector.broadcast %110 : vector<1x32xf32> to vector<16x32xf32>
    %112 = arith.addf %107, %111 : vector<16x32xf32>
    %113 = vector.shape_cast %112 : vector<16x32xf32> to vector<2x8x32xf32>
    %c0_34 = arith.constant 0 : index
    %c0_35 = arith.constant 0 : index
    %c0_36 = arith.constant 0 : index
    %114 = vector.load %arg4[%c0_34, %c0_35, %c0_36] : memref<2x8x32xf32, #tpu.memory_space<vmem>>, vector<2x8x32xf32>
    tpu.vector_store %arg4[%c0_34, %c0_35, %c0_36], %113 {strides = array<i32>} : memref<2x8x32xf32, #tpu.memory_space<vmem>>, vector<2x8x32xf32>,
    return
  }
}

</mosaic_0001>

<bundles_post_ra>
// kernel: tpu_custom_call.1
= control target key start
LH: loop header
LB: loop body
LE: loop exit
PB: predicated region body
PF: predicated region fallthrough
CT: control target
= control target key end

     0   :  { %9 = vsyncpa [#allocation3], 0  ;;  %s2481_s0 = inlined_call_operand.hbm [shape: f32[2,8,32], index: 0, kind: input, shape index: {}]   ;;  %s2482_s1 = inlined_call_operand.hbm [shape: f32[32,96], index: 1, kind: input, shape index: {}]   ;;  %s2483_s2 = inlined_call_operand.hbm [shape: f32[32,32], index: 2, kind: input, shape index: {}]   ;;  %s2484_s3 = inlined_call_operand.vmem [shape: f32[1,32], index: 3, kind: input, shape index: {}]   ;;  %s2485_s4 = inlined_call_operand.hbm [shape: f32[2,8,32], index: 4, kind: output, shape index: {}]  }
   0x1   :  { %10 = vsyncpa [#allocation6], 0 }
   0x2   :  { %11 = vsyncpa [#allocation4], 0  ;;  %s2201_s15 = smov [#allocation5]   ;;  %s2202_s17 = smov [#allocation2]  }
   0x3   :  { %s29_s16 = sshll.u32 %s2201_s15, 4  ;;  %s17_s18 = sshll.u32 %s2202_s17, 4  ;;  %s30_s16 = int_to_ptr.vmem [resolvable:$true] %s29_s16  ;;  %s2245_s18 = int_to_ptr.vmem [resolvable:$true] %s17_s18 }
   0x4   :  { %s2107_s21 = scalar_lea.hbm %s2482_s1, 512 }
   0x5   :  { %p2108_p0 = scmp.ne.s32.totalorder %s2482_s1, %s2107_s21  ;;  %p2111_p1 = scmp.lt.u32.totalorder %s2107_s21, %s2482_s1 }
   0x7   :  { %p2113_p2 = pnand %p2111_p1, %p2108_p0 }
   0x9   :  { %2116 = shalt.err (!%p2113_p2)
}
   0xa   :  { %s2117_s26 = scalar_lea.vmem %s30_s16, 512  ;;  %p2122_p4 = scmp.lt.s32.totalorder %s30_s16, %s30_s16 }
   0xb   :  { %p2118_p3 = scmp.ne.s32.totalorder %s30_s16, %s2117_s26  ;;  %p2123_p5 = scmp.lt.s32.totalorder %s2117_s26, %s2117_s26 }
   0xd   :  { %p2124_p6 = por %p2123_p5, %p2122_p4 }
   0xf   :  { %p2125_p7 = pnand %p2124_p6, %p2118_p3 }
  0x11   :  { %2128 = shalt.err (!%p2125_p7)
}
  0x12   :  { %s2203_s27 = smov 128   ;;  %s2204_s28 = smov 8  }
  0x13   :  { %35 = dma.hbm_to_vmem [thread:$0]  %s2482_s1, 512, %s30_s16, [#allocation6], %s2203_s27, %s2203_s27, %s2204_s28  }
  0x14   :  { %s2129_s7 = scalar_lea.hbm %s2481_s0, 256 }
  0x15   :  { %p2130_p8 = scmp.ne.s32.totalorder %s2481_s0, %s2129_s7  ;;  %p2133_p9 = scmp.lt.u32.totalorder %s2129_s7, %s2481_s0 }
  0x17   :  { %p2135_p10 = pnand %p2133_p9, %p2130_p8 }
  0x19   :  { %2138 = shalt.err (!%p2135_p10)
}
  0x1a   :  { %s2139_s12 = scalar_lea.vmem %s2245_s18, 256  ;;  %p2144_p12 = scmp.lt.s32.totalorder %s2245_s18, %s2245_s18 }
  0x1b   :  { %p2140_p11 = scmp.ne.s32.totalorder %s2245_s18, %s2139_s12  ;;  %p2145_p13 = scmp.lt.s32.totalorder %s2139_s12, %s2139_s12 }
  0x1d   :  { %p2146_p0 = por %p2145_p13, %p2144_p12 }
  0x1f   :  { %p2147_p1 = pnand %p2146_p0, %p2140_p11 }
  0x21   :  { %2150 = shalt.err (!%p2147_p1)
}
  0x22   :  { %23 = dma.hbm_to_vmem [thread:$0]  %s2481_s0, 256, %s2245_s18, [#allocation3], %s2203_s27, %s2203_s27, %s2204_s28  }
  0x23   :  { %s2205_s14 = smov [#allocation7]   ;;  %s2151_s19 = scalar_lea.hbm %s2483_s2, 512 }
  0x24   :  { %s41_s15 = sshll.u32 %s2205_s14, 4  ;;  %p2152_p2 = scmp.ne.s32.totalorder %s2483_s2, %s2151_s19  ;;  %s42_s15 = int_to_ptr.vmem [resolvable:$true] %s41_s15 }
  0x25   :  { %p2155_p3 = scmp.lt.u32.totalorder %s2151_s19, %s2483_s2 }
  0x27   :  { %p2157_p4 = pnand %p2155_p3, %p2152_p2 }
  0x29   :  { %2160 = shalt.err (!%p2157_p4)
}
  0x2a   :  { %s2161_s24 = scalar_lea.vmem %s42_s15, 512  ;;  %p2166_p6 = scmp.lt.s32.totalorder %s42_s15, %s42_s15 }
  0x2b   :  { %p2162_p5 = scmp.ne.s32.totalorder %s42_s15, %s2161_s24  ;;  %p2167_p7 = scmp.lt.s32.totalorder %s2161_s24, %s2161_s24 }
  0x2d   :  { %p2168_p8 = por %p2167_p7, %p2166_p6 }
  0x2f   :  { %p2169_p9 = pnand %p2168_p8, %p2162_p5 }
  0x31   :  { %2172 = shalt.err (!%p2169_p9)
}
  0x32   :  { %47 = dma.hbm_to_vmem [thread:$0]  %s2483_s2, 512, %s42_s15, [#allocation6], %s2203_s27, %s2203_s27, %s2204_s28  }
  0x33   :  { %2195 = dma.done.wait [#allocation3], 256  }
  0x34   :  { %2196 = vsyncadd [#allocation3], 4294967040 }
  0x35   :  { %2197 = dma.done.wait [#allocation6], 1024  }
  0x36   :  { %2198 = vsyncadd [#allocation6], 4294966272  ;;  %vm65_vm0 = vcmask 261120   ;;  %v61_v0 = vld [vmem:[#allocation5] sm:$0xff]  ;;  %v62_v1 = vld [vmem:[#allocation5 + $0x8] sm:$0xff]  ;;  %v2206_v8 = vmov 0.0   ;;  %v149_v15 = vlaneseq }
  0x37   :  { %v63_v2 = vld [vmem:[#allocation5 + $0x10] sm:$0xff]  ;;  %v2042_v3 = vpack.c.bf16 %v62_v1, %v61_v0  ;;  %v64_v4 = vld [vmem:[#allocation5 + $0x18] sm:$0xff]  ;;  %1942 = vmatprep.subr.mxu1 %v2206_v8  ;;  %vm2207_vm1 = vmmov 0   ;;  %s2208_s2 = smov 96   ;;  %vm161_vm2 = vcmask 64512   ;;  %s2209_s25 = smov 64  }
  0x38   :  { %v59_v5 = vld [vmem:[#allocation2] sm:$0xff]  ;;  %v2046_v6 = vpack.c.bf16 %v64_v4, %v63_v2  ;;  %v60_v7 = vld [vmem:[#allocation2 + $0x8] sm:$0xff]  ;;  %1944 = vmatprep.mubr.msk.f32.mxu1 %vm2207_vm1, %v2206_v8  ;;  %v150_v16 = vshrl.u32 %v149_v15, 7  ;;  %v152_v17 = vand.u32 127, %v149_v15  ;;  %s2210_s26 = smov 88   ;;  %s2211_s29 = smov 120  }
  0x39   :  { %1939 = vmatprep.mubr.msk.f32.mxu0 %vm65_vm0, %v59_v5  ;;  %2043 = vmatprep.subr.bf16.mxu0 %v2042_v3  ;;  %s2212_s30 = smov 56   ;;  %s2213_s5 = smov 112  }
  0x3a   :  { %2045 = vmatpush3.bf16.msra.mxu0 %v2042_v3  ;;  %vm2329_vm3 = vcmp.le.s32.totalorder %v152_v17, %v150_v16  ;;  %s2214_s6 = smov 80   ;;  %s2215_s7 = smov 48  }
  0x3b   :  { %2047 = vmatprep.subr.bf16.mxu0 %v2046_v6  ;;  %s2216_s8 = smov 72   ;;  %s2217_s9 = smov 104  }
  0x3c   :  { %s2218_s10 = smov 40   ;;  %s2219_s1 = smov [#allocation8]  }
  0x3d   :  { %s1833_s13 = sshll.u32 %s2219_s1, 4  ;;  %s1834_s13 = int_to_ptr.vmem [resolvable:$true] %s1833_s13 }
  0x3e   :  { %2049 = vmatpush3.bf16.msra.mxu0 %v2046_v6  ;;  %s2173_s14 = scalar_lea.vmem %s1834_s13, 256  ;;  %p2178_p11 = scmp.lt.s32.totalorder %s1834_s13, %s1834_s13 }
  0x3f   :  { %1962 = vmatprep.subr.mxu0 %v2206_v8  ;;  %p2174_p10 = scmp.ne.s32.totalorder %s1834_s13, %s2173_s14  ;;  %p2179_p12 = scmp.lt.s32.totalorder %s2173_s14, %s2173_s14 }
  0x41   :  { %1940 = vmatmul.mubr.msk.f32.vlgmr.msra.gmra.mrb[0].mxu0 %vm65_vm0, %v60_v7  ;;  %p2180_p13 = por %p2179_p12, %p2178_p11 }
  0x42   :  { %1964 = vmatprep.mubr.msk.f32.mxu0 %vm2207_vm1, %v2206_v8 }
  0x43   :  { %p2181_p0 = pnand %p2180_p13, %p2174_p10 }
 0x114   :  { %v2305_v9 = vpop.f32.mrb[0].mxu0 }
 0x115   :  { %v2307_v10 = vpop.f32.mrb[1].mxu0  ;;  %v2322_v14 = vmul.f32 0.17677669, %v2305_v9 }
 0x116   :  { %159 = vrot.lane.b32.xlu0 %v2307_v10, %s2208_s2  ;;  %v2314_v12 = vmul.f32 0.17677669, %v2307_v10 }
 0x11a   :  { %238 = vrot.lane.b32.xlu0 %v2305_v9, %s2208_s2 }
 0x188   :  { %v160_v11 = vpop.permute.xlu0 %159 }
 0x189   :  { %1943 = vmatpush3.xpose.msk.msra.mxu1 %vm161_vm2, %v160_v11 }
 0x18a   :  { %1947 = vmatprep.subr.mxu1 %v2206_v8 }
 0x18c   :  { %v239_v13 = vpop.permute.xlu0 %238  ;;  %1945 = vmatmul.mubr.msk.f32.vlgmr.msra.gmra.mrb[0].mxu1 %vm161_vm2, %v2314_v12 }
 0x18d   :  { %1948 = vmatpush3.xpose.msk.msra.mxu1 %vm161_vm2, %v239_v13  ;;  %1949 = vmatprep.mubr.msk.f32.mxu1 %vm2207_vm1, %v2206_v8 }
 0x18e   :  { %1952 = vmatprep.subr.mxu1 %v2206_v8 }
 0x190   :  { %1950 = vmatmul.mubr.msk.f32.vlgmr.msra.gmra.mrb[2].mxu1 %vm161_vm2, %v2322_v14 }
 0x191   :  { %1954 = vmatprep.mubr.msk.f32.mxu1 %vm2207_vm1, %v2206_v8 }
 0x25f   :  { %v233_v19 = vpop.f32.mrb[0].mxu1 }
 0x260   :  { %v317_v20 = vsel %vm2329_vm3, %v233_v19, -1e+30  ;;  %v1946_v21 = vpop.f32.mrb[1].mxu1 }
 0x261   :  { %v319_v22 = vsel %vm161_vm2, %v317_v20, -inf }
 0x262   :  { %320 = vmax.xlane.f32.xlu1 %v319_v22 }
 0x263   :  { %v311_v23 = vpop.f32.mrb[2].mxu1 }
 0x264   :  { %v318_v24 = vsel %vm2329_vm3, %v311_v23, -1e+30  ;;  %v1951_v25 = vpop.f32.mrb[3].mxu1 }
 0x265   :  { %v322_v26 = vsel %vm161_vm2, %v318_v24, -inf  ;;  %v155_v25 = vld [vmem:[#allocation7 + $0x8] sm:$0xff] }
 0x266   :  { %323 = vmax.xlane.f32.xlu1 %v322_v26  ;;  %v154_v26 = vld [vmem:[#allocation7] sm:$0xff] }
 0x277   :  { %341 = vrot.lane.b32.xlu1 %v2307_v10, %s2209_s25 }
 0x27b   :  { %417 = vrot.lane.b32.xlu1 %v2305_v9, %s2209_s25 }
 0x27f   :  { %573 = vrot.lane.b32.xlu1 %v2305_v9, %s2210_s26 }
 0x2ef   :  { %v321_v27 = vpop.xlane.xlu1 %320 }
 0x2f0   :  { %v325_v28 = vsub.f32 %v317_v20, %v321_v27 }
 0x2f2   :  { %v327_v29 = vmul.f32 1.442695, %v325_v28 }
 0x2f3   :  { %v324_v30 = vpop.xlane.xlu1 %323 }
 0x2f4   :  { %2075 = vpow2.f32 %v327_v29  ;;  %v326_v31 = vsub.f32 %v318_v24, %v324_v30 }
 0x2f6   :  { %v329_v32 = vmul.f32 1.442695, %v326_v31 }
 0x2f7   :  { %v342_v33 = vpop.permute.xlu1 %341 }
 0x2f8   :  { %2077 = vpow2.f32 %v329_v32  ;;  %1953 = vmatpush3.msra.mxu1 %v342_v33 }
 0x2f9   :  { %1957 = vmatprep.subr.mxu1 %v2206_v8 }
 0x2fb   :  { %v418_v38 = vpop.permute.xlu1 %417 }
 0x2fe   :  { %v2076_v34 = vpop.eup %2075 }
 0x2ff   :  { %v331_v35 = vsel %vm161_vm2, %v2076_v34, 0.0  ;;  %v574_v39 = vpop.permute.xlu1 %573 }
 0x300   :  { %332 = vadd.xlane.f32.xlu0 %v331_v35 }
 0x302   :  { %v2078_v36 = vpop.eup %2077 }
 0x303   :  { %v334_v37 = vsel %vm161_vm2, %v2078_v36, 0.0 }
 0x304   :  { %335 = vadd.xlane.f32.xlu1 %v334_v37 }
 0x315   :  { %571 = vrot.lane.b32.xlu1 %v2322_v14, %s2211_s29 }
 0x316   :  { %495 = vrot.lane.b32.xlu0 %v2307_v10, %s2210_s26 }
 0x319   :  { %493 = vrot.lane.b32.xlu1 %v2314_v12, %s2211_s29 }
 0x38d   :  { %v333_v40 = vpop.xlane.xlu0 %332 }
 0x38e   :  { %2079 = vrcp.f32 %v333_v40 }
 0x391   :  { %v496_v41 = vpop.permute.xlu0 %495  ;;  %v336_v42 = vpop.xlane.xlu1 %335 }
 0x392   :  { %2081 = vrcp.f32 %v336_v42  ;;  %1963 = vmatpush3.xpose.msk.msra.mxu0 %vm161_vm2, %v496_v41 }
 0x393   :  { %1972 = vmatprep.subr.mxu0 %v2206_v8 }
 0x395   :  { %v572_v43 = vpop.permute.xlu1 %571 }
 0x398   :  { %v2080_v44 = vpop.eup %2079 }
 0x399   :  { %v339_v45 = vmul.f32 %v2080_v44, %v2076_v34  ;;  %v494_v46 = vpop.permute.xlu1 %493 }
 0x39a   :  { %1965 = vmatmul.mubr.msk.f32.vlgmr.msra.gmra.mrb[2].mxu0 %vm161_vm2, %v494_v46 }
 0x39b   :  { %1955 = vmatmul.mubr.msk.f32.vlgmr.msra.gmra.mrb[4].mxu1 %vm161_vm2, %v339_v45  ;;  %1974 = vmatprep.mubr.msk.f32.mxu0 %vm2207_vm1, %v2206_v8 }
 0x39c   :  { %v2082_v47 = vpop.eup %2081  ;;  %1958 = vmatpush3.msra.mxu1 %v418_v38  ;;  %1959 = vmatprep.mubr.msk.f32.mxu1 %vm2207_vm1, %v2206_v8 }
 0x39d   :  { %v340_v48 = vmul.f32 %v2082_v47, %v2078_v36  ;;  %1967 = vmatprep.subr.mxu1 %v2206_v8 }
 0x39f   :  { %1960 = vmatmul.mubr.msk.f32.vlgmr.msra.gmra.mrb[6].mxu1 %vm161_vm2, %v340_v48 }
 0x3a0   :  { %1969 = vmatprep.mubr.msk.f32.mxu1 %vm2207_vm1, %v2206_v8 }
 0x3a3   :  { %1968 = vmatpush3.xpose.msk.msra.mxu1 %vm161_vm2, %v574_v39 }
 0x3a4   :  { %1977 = vmatprep.subr.mxu1 %v2206_v8 }
 0x3a6   :  { %1970 = vmatmul.mubr.msk.f32.vlgmr.msra.gmra.mrb[8].mxu1 %vm161_vm2, %v572_v43 }
 0x3a7   :  { %1979 = vmatprep.mubr.msk.f32.mxu1 %vm2207_vm1, %v2206_v8 }
 0x46d   :  { %v567_v49 = vpop.f32.mrb[2].mxu0 }
 0x46e   :  { %v2365_v50 = vpop.f32.mrb[4].mxu1  ;;  %v1966_v51 = vpop.f32.mrb[3].mxu0  ;;  %v649_v59 = vsel %vm2329_vm3, %v567_v49, -1e+30 }
 0x46f   :  { %v1956_v52 = vpop.f32.mrb[5].mxu1  ;;  %v651_v60 = vsel %vm161_vm2, %v649_v59, -inf  ;;  %v156_v51 = vld [vmem:[#allocation7 + $0x10] sm:$0xff] }
 0x472   :  { %v2367_v53 = vpop.f32.mrb[6].mxu1 }
 0x473   :  { %v1961_v54 = vpop.f32.mrb[7].mxu1 }
 0x479   :  { %v645_v55 = vpop.f32.mrb[8].mxu1 }
 0x47a   :  { %v650_v56 = vsel %vm2329_vm3, %v645_v55, -1e+30  ;;  %v1971_v57 = vpop.f32.mrb[9].mxu1 }
 0x47b   :  { %v654_v58 = vsel %vm161_vm2, %v650_v56, -inf }
 0x47c   :  { %655 = vmax.xlane.f32.xlu1 %v654_v58 }
 0x48d   :  { %749 = vrot.lane.b32.xlu1 %v2305_v9, %s2212_s30 }
 0x491   :  { %987 = vrot.lane.b32.xlu1 %v2314_v12, %s2213_s5 }
 0x495   :  { %1067 = vrot.lane.b32.xlu1 %v2305_v9, %s2214_s6 }
 0x499   :  { %1065 = vrot.lane.b32.xlu1 %v2322_v14, %s2213_s5 }
 0x4bd   :  { %652 = vmax.xlane.f32.xlu1 %v651_v60 }
 0x509   :  { %v656_v61 = vpop.xlane.xlu1 %655 }
 0x50a   :  { %v658_v62 = vsub.f32 %v650_v56, %v656_v61 }
 0x50c   :  { %v661_v63 = vmul.f32 1.442695, %v658_v62 }
 0x50d   :  { %v750_v0 = vpop.permute.xlu1 %749 }
 0x50e   :  { %2083 = vpow2.f32 %v661_v63  ;;  %1978 = vmatpush3.msra.mxu1 %v750_v0 }
 0x50f   :  { %1992 = vmatprep.subr.mxu1 %v2206_v8 }
 0x511   :  { %v988_v3 = vpop.permute.xlu1 %987 }
 0x515   :  { %v1068_v4 = vpop.permute.xlu1 %1067 }
 0x518   :  { %v2084_v1 = vpop.eup %2083 }
 0x519   :  { %v666_v2 = vsel %vm161_vm2, %v2084_v1, 0.0  ;;  %v1066_v5 = vpop.permute.xlu1 %1065 }
 0x51a   :  { %667 = vadd.xlane.f32.xlu0 %v666_v2 }
 0x530   :  { %989 = vrot.lane.b32.xlu0 %v2307_v10, %s2214_s6 }
 0x54a   :  { %v653_v6 = vpop.xlane.xlu1 %652 }
 0x54b   :  { %v657_v7 = vsub.f32 %v649_v59, %v653_v6 }
 0x54d   :  { %v659_v11 = vmul.f32 1.442695, %v657_v7 }
 0x54f   :  { %2085 = vpow2.f32 %v659_v11 }
 0x559   :  { %v2086_v13 = vpop.eup %2085 }
 0x55a   :  { %v663_v15 = vsel %vm161_vm2, %v2086_v13, 0.0 }
 0x55b   :  { %664 = vadd.xlane.f32.xlu0 %v663_v15 }
 0x571   :  { %673 = vrot.lane.b32.xlu0 %v2307_v10, %s2212_s30 }
 0x575   :  { %1243 = vrot.lane.b32.xlu0 %v2305_v9, %s2215_s7 }
 0x579   :  { %1404 = vrot.lane.b32.xlu0 %v2307_v10, %s2216_s8 }
 0x57d   :  { %1482 = vrot.lane.b32.xlu0 %v2305_v9, %s2216_s8 }
 0x581   :  { %1402 = vrot.lane.b32.xlu0 %v2314_v12, %s2217_s9 }
 0x5a7   :  { %v668_v16 = vpop.xlane.xlu0 %667 }
 0x5a8   :  { %2087 = vrcp.f32 %v668_v16 }
 0x5ab   :  { %v990_v20 = vpop.permute.xlu0 %989 }
 0x5b2   :  { %v2088_v17 = vpop.eup %2087 }
 0x5b3   :  { %v672_v19 = vmul.f32 %v2088_v17, %v2084_v1 }
 0x5b5   :  { %1980 = vmatmul.mubr.msk.f32.vlgmr.msra.gmra.mrb[10].mxu1 %vm161_vm2, %v672_v19 }
 0x5b6   :  { %1993 = vmatpush3.xpose.msk.msra.mxu1 %vm161_vm2, %v990_v20  ;;  %1994 = vmatprep.mubr.msk.f32.mxu1 %vm2207_vm1, %v2206_v8 }
 0x5b7   :  { %1997 = vmatprep.subr.mxu1 %v2206_v8 }
 0x5b9   :  { %1995 = vmatmul.mubr.msk.f32.vlgmr.msra.gmra.mrb[12].mxu1 %vm161_vm2, %v988_v3 }
 0x5ba   :  { %1998 = vmatpush3.xpose.msk.msra.mxu1 %vm161_vm2, %v1068_v4  ;;  %1999 = vmatprep.mubr.msk.f32.mxu1 %vm2207_vm1, %v2206_v8 }
 0x5bb   :  { %2007 = vmatprep.subr.mxu1 %v2206_v8 }
 0x5bd   :  { %2000 = vmatmul.mubr.msk.f32.vlgmr.msra.gmra.mrb[14].mxu1 %vm161_vm2, %v1066_v5 }
 0x5be   :  { %2009 = vmatprep.mubr.msk.f32.mxu1 %vm2207_vm1, %v2206_v8 }
 0x5e8   :  { %v665_v12 = vpop.xlane.xlu0 %664 }
 0x5e9   :  { %2089 = vrcp.f32 %v665_v12 }
 0x5ec   :  { %v674_v21 = vpop.permute.xlu0 %673 }
 0x5ed   :  { %1973 = vmatpush3.msra.mxu0 %v674_v21 }
 0x5ee   :  { %1982 = vmatprep.subr.mxu0 %v155_v25 }
 0x5f0   :  { %v1244_v22 = vpop.permute.xlu0 %1243 }
 0x5f1   :  { %2008 = vmatpush3.msra.mxu1 %v1244_v22 }
 0x5f2   :  { %2017 = vmatprep.subr.mxu1 %v2206_v8 }
 0x5f3   :  { %v2090_v23 = vpop.eup %2089 }
 0x5f4   :  { %v671_v24 = vmul.f32 %v2090_v23, %v2086_v13 }
 0x5f6   :  { %1975 = vmatmul.mubr.msk.f32.vlgmr.msra.gmra.mrb[4].mxu0 %vm161_vm2, %v671_v24 }
 0x5f7   :  { %1983 = vmatpush3.msra.mxu0 %v155_v25 }
 0x5f8   :  { %1987 = vmatprep.subr.mxu0 %v154_v26 }
 0x688   :  { %v821_v27 = vpop.f32.mrb[10].mxu1 }
 0x689   :  { %v1981_v28 = vpop.f32.mrb[11].mxu1 }
 0x68c   :  { %v1061_v29 = vpop.f32.mrb[12].mxu1 }
 0x68d   :  { %v1143_v30 = vsel %vm2329_vm3, %v1061_v29, -1e+30  ;;  %v1996_v31 = vpop.f32.mrb[13].mxu1 }
 0x68e   :  { %v1145_v32 = vsel %vm161_vm2, %v1143_v30, -inf }
 0x68f   :  { %1146 = vmax.xlane.f32.xlu1 %v1145_v32 }
 0x690   :  { %v1139_v33 = vpop.f32.mrb[14].mxu1 }
 0x691   :  { %v1144_v34 = vsel %vm2329_vm3, %v1139_v33, -1e+30  ;;  %v2001_v35 = vpop.f32.mrb[15].mxu1 }
 0x692   :  { %v1148_v36 = vsel %vm161_vm2, %v1144_v34, -inf }
 0x693   :  { %1149 = vmax.xlane.f32.xlu1 %v1148_v36 }
 0x6c9   :  { %v745_v37 = vpop.f32.mrb[4].mxu0 }
 0x6ca   :  { %v1976_v38 = vpop.f32.mrb[5].mxu0  ;;  %1984 = vmatprep.mubr.msk.f32.mxu0 %vm161_vm2, %v745_v37 }
 0x6cb   :  { %1985 = vmatmul.mubr.msk.f32.vlgmr.msra.gmra.mrb[6].mxu0 %vm161_vm2, %v821_v27 }
 0x6cc   :  { %1989 = vmatprep.mubr.msk.f32.mxu0 %vm161_vm2, %v2365_v50  ;;  %1988 = vmatpush3.msra.mxu0 %v154_v26 }
 0x6cd   :  { %2002 = vmatprep.subr.mxu0 %v2206_v8 }
 0x6d3   :  { %1990 = vmatmul.mubr.msk.f32.vlgmr.msra.gmra.mrb[6].mxu0 %vm161_vm2, %v2367_v53  ;;  %v1405_v53 = vpop.permute.xlu0 %1404 }
 0x6d4   :  { %2004 = vmatprep.mubr.msk.f32.mxu0 %vm2207_vm1, %v2206_v8 }
 0x6d7   :  { %v1483_v57 = vpop.permute.xlu0 %1482 }
 0x71c   :  { %v1147_v39 = vpop.xlane.xlu1 %1146 }
 0x71d   :  { %v1151_v40 = vsub.f32 %v1143_v30, %v1147_v39 }
 0x71f   :  { %v1153_v41 = vmul.f32 1.442695, %v1151_v40 }
 0x720   :  { %v1150_v42 = vpop.xlane.xlu1 %1149 }
 0x721   :  { %2091 = vpow2.f32 %v1153_v41  ;;  %v1152_v43 = vsub.f32 %v1144_v34, %v1150_v42 }
 0x723   :  { %v1155_v44 = vmul.f32 1.442695, %v1152_v43 }
 0x725   :  { %2093 = vpow2.f32 %v1155_v44 }
 0x72b   :  { %v2092_v45 = vpop.eup %2091 }
 0x72c   :  { %v1157_v46 = vsel %vm161_vm2, %v2092_v45, 0.0 }
 0x72d   :  { %1158 = vadd.xlane.f32.xlu1 %v1157_v46 }
 0x72f   :  { %v2094_v47 = vpop.eup %2093 }
 0x730   :  { %v1160_v48 = vsel %vm161_vm2, %v2094_v47, 0.0 }
 0x731   :  { %1161 = vadd.xlane.f32.xlu1 %v1160_v48 }
 0x742   :  { %1167 = vrot.lane.b32.xlu1 %v2307_v10, %s2215_s7 }
 0x746   :  { %1480 = vrot.lane.b32.xlu1 %v2322_v14, %s2217_s9  ;;  %v1403_v14 = vpop.permute.xlu0 %1402 }
 0x7ba   :  { %v1159_v49 = vpop.xlane.xlu1 %1158 }
 0x7bb   :  { %2095 = vrcp.f32 %v1159_v49 }
 0x7be   :  { %v1162_v50 = vpop.xlane.xlu1 %1161 }
 0x7bf   :  { %2097 = vrcp.f32 %v1162_v50 }
 0x7c2   :  { %v1168_v52 = vpop.permute.xlu1 %1167 }
 0x7c3   :  { %2003 = vmatpush3.msra.mxu0 %v1168_v52 }
 0x7c4   :  { %2012 = vmatprep.subr.mxu0 %v156_v51 }
 0x7c5   :  { %v2096_v54 = vpop.eup %2095 }
 0x7c6   :  { %v1165_v55 = vmul.f32 %v2096_v54, %v2092_v45  ;;  %v1481_v63 = vpop.permute.xlu1 %1480 }
 0x7c8   :  { %2005 = vmatmul.mubr.msk.f32.vlgmr.msra.gmra.mrb[8].mxu0 %vm161_vm2, %v1165_v55 }
 0x7c9   :  { %v2098_v56 = vpop.eup %2097  ;;  %2013 = vmatpush3.msra.mxu0 %v156_v51 }
 0x7ca   :  { %v1166_v58 = vmul.f32 %v2098_v56, %v2094_v47  ;;  %2022 = vmatprep.subr.mxu0 %v2206_v8 }
 0x7cc   :  { %2010 = vmatmul.mubr.msk.f32.vlgmr.msra.gmra.mrb[16].mxu1 %vm161_vm2, %v1166_v58 }
 0x7cd   :  { %2018 = vmatpush3.xpose.msk.msra.mxu1 %vm161_vm2, %v1405_v53  ;;  %2019 = vmatprep.mubr.msk.f32.mxu1 %vm2207_vm1, %v2206_v8 }
 0x7ce   :  { %2027 = vmatprep.subr.mxu1 %v2206_v8 }
 0x7d0   :  { %2020 = vmatmul.mubr.msk.f32.vlgmr.msra.gmra.mrb[18].mxu1 %vm161_vm2, %v1403_v14 }
 0x7d1   :  { %2029 = vmatprep.mubr.msk.f32.mxu1 %vm2207_vm1, %v2206_v8 }
 0x89b   :  { %v1239_v59 = vpop.f32.mrb[8].mxu0 }
 0x89c   :  { %v2006_v60 = vpop.f32.mrb[9].mxu0  ;;  %2014 = vmatprep.mubr.msk.f32.mxu0 %vm161_vm2, %v1239_v59 }
 0x89f   :  { %v1315_v61 = vpop.f32.mrb[16].mxu1 }
 0x8a0   :  { %v2011_v62 = vpop.f32.mrb[17].mxu1  ;;  %2015 = vmatmul.mubr.msk.f32.vlgmr.msra.gmra.mrb[6].mxu0 %vm161_vm2, %v1315_v61 }
 0x8a1   :  { %2023 = vmatpush3.xpose.msk.msra.mxu0 %vm161_vm2, %v1483_v57  ;;  %2024 = vmatprep.mubr.msk.f32.mxu0 %vm2207_vm1, %v2206_v8 }
 0x8a2   :  { %2032 = vmatprep.subr.mxu0 %v2206_v8 }
 0x8a3   :  { %v1476_v0 = vpop.f32.mrb[18].mxu1 }
 0x8a4   :  { %v1558_v1 = vsel %vm2329_vm3, %v1476_v0, -1e+30  ;;  %v2021_v2 = vpop.f32.mrb[19].mxu1  ;;  %2025 = vmatmul.mubr.msk.f32.vlgmr.msra.gmra.mrb[10].mxu0 %vm161_vm2, %v1481_v63 }
 0x8a5   :  { %v1560_v3 = vsel %vm161_vm2, %v1558_v1, -inf  ;;  %2034 = vmatprep.mubr.msk.f32.mxu0 %vm2207_vm1, %v2206_v8 }
 0x8a6   :  { %1561 = vmax.xlane.f32.xlu0 %v1560_v3 }
 0x933   :  { %v1562_v4 = vpop.xlane.xlu0 %1561 }
 0x934   :  { %v1566_v5 = vsub.f32 %v1558_v1, %v1562_v4 }
 0x936   :  { %v1568_v6 = vmul.f32 1.442695, %v1566_v5 }
 0x938   :  { %2099 = vpow2.f32 %v1568_v6 }
 0x942   :  { %v2100_v7 = vpop.eup %2099 }
 0x943   :  { %v1572_v11 = vsel %vm161_vm2, %v2100_v7, 0.0 }
 0x944   :  { %1573 = vadd.xlane.f32.xlu0 %v1572_v11 }
 0x977   :  { %v1554_v13 = vpop.f32.mrb[10].mxu0 }
 0x978   :  { %v1559_v15 = vsel %vm2329_vm3, %v1554_v13, -1e+30  ;;  %v2026_v16 = vpop.f32.mrb[11].mxu0 }
 0x979   :  { %v1563_v17 = vsel %vm161_vm2, %v1559_v15, -inf }
 0x97a   :  { %1564 = vmax.xlane.f32.xlu1 %v1563_v17 }
 0x98b   :  { %1582 = vrot.lane.b32.xlu1 %v2307_v10, %s2218_s10  ;;  %v157_v10 = vld [vmem:[#allocation7 + $0x18] sm:$0xff] }
 0x9d1   :  { %v1574_v8 = vpop.xlane.xlu0 %1573 }
 0x9d2   :  { %2101 = vrcp.f32 %v1574_v8 }
 0x9dc   :  { %v2102_v20 = vpop.eup %2101 }
 0x9dd   :  { %v1580_v22 = vmul.f32 %v2102_v20, %v2100_v7 }
 0xa07   :  { %v1565_v19 = vpop.xlane.xlu1 %1564 }
 0xa08   :  { %v1567_v12 = vsub.f32 %v1559_v15, %v1565_v19 }
 0xa0a   :  { %v1570_v21 = vmul.f32 1.442695, %v1567_v12 }
 0xa0b   :  { %v1583_v23 = vpop.permute.xlu1 %1582 }
 0xa0c   :  { %2103 = vpow2.f32 %v1570_v21  ;;  %2028 = vmatpush3.msra.mxu1 %v1583_v23 }
 0xa0d   :  { %2030 = vmatmul.mubr.msk.f32.vlgmr.msra.gmra.mrb[20].mxu1 %vm161_vm2, %v1580_v22 }
 0xa16   :  { %v2104_v18 = vpop.eup %2103 }
 0xa17   :  { %v1575_v24 = vsel %vm161_vm2, %v2104_v18, 0.0 }
 0xa18   :  { %1576 = vadd.xlane.f32.xlu0 %v1575_v24 }
 0xa2e   :  { %1658 = vrot.lane.b32.xlu0 %v2305_v9, %s2218_s10  ;;  %v1880_v9 = vld [vmem:[%s2484_s3] ss:$0 sm:$0xff] }
 0xaa5   :  { %v1577_v25 = vpop.xlane.xlu0 %1576 }
 0xaa6   :  { %2105 = vrcp.f32 %v1577_v25 }
 0xaa9   :  { %v1659_v26 = vpop.permute.xlu0 %1658 }
 0xaaa   :  { %2033 = vmatpush3.msra.mxu0 %v1659_v26 }
 0xaab   :  { %2037 = vmatprep.subr.mxu0 %v157_v10 }
 0xab0   :  { %v2106_v27 = vpop.eup %2105 }
 0xab1   :  { %v1581_v28 = vmul.f32 %v2106_v27, %v2104_v18 }
 0xab3   :  { %2035 = vmatmul.mubr.msk.f32.vlgmr.msra.gmra.mrb[12].mxu0 %vm161_vm2, %v1581_v28 }
 0xab4   :  { %2038 = vmatpush3.msra.mxu0 %v157_v10 }
 0xae0   :  { %v1654_v29 = vpop.f32.mrb[20].mxu1 }
 0xae1   :  { %v2031_v30 = vpop.f32.mrb[21].mxu1  ;;  %2039 = vmatprep.mubr.msk.f32.mxu0 %vm161_vm2, %v1654_v29 }
 0xb86   :  { %v1730_v31 = vpop.f32.mrb[12].mxu0 }
 0xb87   :  { %v2036_v32 = vpop.f32.mrb[13].mxu0  ;;  %2040 = vmatmul.mubr.msk.f32.vlgmr.msra.gmra.mrb[6].mxu0 %vm161_vm2, %v1730_v31 }
 0xc5a   :  { %v2041_v33 = vpop.f32.mrb[6].mxu0 }
 0xc5b   :  { %v1825_v34 = vadd.f32 %v2041_v33, %v1880_v9  ;;  %v1806_v35 = vpop.f32.mrb[7].mxu0 }
 0xc5c   :  { %v1824_v36 = vadd.f32 %v1880_v9, %v1806_v35 }
 0xc5d   :  { %1827 = vst.msk [vmem:[#allocation8 + $0x8] sm:$0xff] %vm65_vm0, %v1825_v34 }
 0xc5e   :  { %1826 = vst.msk [vmem:[#allocation8] sm:$0xff] %vm65_vm0, %v1824_v36 }
 0xc5f   :  { %2184 = shalt.err (!%p2181_p0)
}
 0xc60   :  { %s2185_s16 = scalar_lea.hbm %s2485_s4, 256 }
 0xc61   :  { %p2186_p1 = scmp.ne.s32.totalorder %s2485_s4, %s2185_s16  ;;  %p2189_p2 = scmp.lt.u32.totalorder %s2185_s16, %s2485_s4 }
 0xc63   :  { %p2191_p3 = pnand %p2189_p2, %p2186_p1 }
 0xc65   :  { %2194 = shalt.err (!%p2191_p3)
}
 0xc66   :  { %1839 = dma.vmem_to_hbm [thread:$0]  %s1834_s13, 256, %s2485_s4, [#allocation4], %s2203_s27, %s2203_s27, %s2204_s28  }
 0xc67   :  { %2199 = dma.done.wait [#allocation4], 256  }
 0xc68   :  { %2200 = vsyncadd [#allocation4], 4294967040 }
 0xc69   :  { %1843 = vsyncpa [#allocation3], 1 }
 0xc6a   :  { %1844 = vsyncpa [#allocation6], 1 }
 0xc6b   :  { %1845 = vsyncpa [#allocation4], 1 }

</bundles_post_ra>
